<compile_context>
chip_gen: v7x
topology: tpu7x:2x2x1
jax: 0.10.0
libtpu: 0.0.40
codegen_flags: <defaults>
</compile_context>

<pallas_src>
import jax
import jax.numpy as jnp
from jax.experimental import pallas as pl
from jax.experimental.pallas import tpu as pltpu

num_filters = 8
HIDDEN_DIM1 = 20 * num_filters   # 160
HIDDEN_DIM2 = 20 * num_filters   # 160
HIDDEN_DIM3 = 20 * num_filters   # 160
HIDDEN_DIM4 = 20 * num_filters   # 160
LATENT_DIM = 10 * num_filters    # 80
OUTPUT_DIM = 64                  # synthetic output_dim for this test

_LANE = 128
_SUBLANE = 8


def _round_up(x, m):
    return ((x + m - 1) // m) * m


def _pad_2d(a, rows, cols):
    return jnp.pad(a, ((0, rows - a.shape[0]), (0, cols - a.shape[1])))


def _chip_info():
    """Best-effort chip detection; gates v7x-specific tuning with safe fallbacks."""
    kind = ""
    try:
        kind = jax.devices()[0].device_kind.lower()
    except Exception:
        pass
    is_v7x = ("v7" in kind) or ("tpu7" in kind) or ("7x" in kind)
    num_cores = 2 if is_v7x else 1          # TensorCores sharing the "parallel" axis
    # Default scoped VMEM (16 MiB v5e / 32 MiB v6e,v7x) is too small for
    # 2048-row tiles; raise it but leave headroom below physical capacity
    # (128 MiB v5e/v6e, 64 MiB v7x).
    vmem_limit = (48 << 20) if is_v7x else (64 << 20)
    return is_v7x, num_cores, vmem_limit


def _choose_batch_tile(B, num_cores, batch_tile):
    if batch_tile is not None:
        return _round_up(batch_tile, _SUBLANE)
    # Large tiles amortize the ~0.35 us per-grid-step overhead; a 2048-row
    # tile's I/O + intermediates is ~10-15 MiB, well inside even v7x VMEM.
    tile = min(2048, _round_up(B, _SUBLANE))
    if tile > _LANE:
        # Multiples of 128 keep v5e's 4x 128^2 MXUs (and v6e/v7x 256^2) fed.
        tile = _round_up(tile, _LANE)
    if num_cores > 1 and B >= 2 * _LANE:
        # v7x: cap the tile so the "parallel" batch axis has >= num_cores
        # grid steps and the second TensorCore is never idle.
        per_core = _round_up(-(-B // num_cores), _LANE)
        tile = min(tile, per_core)
    return max(_SUBLANE, tile)


def _make_decoder_kernel(precision):
    def decoder_kernel(x_ref,
                       w1_ref, b1_ref,
                       w2_ref, b2_ref,
                       w3_ref, b3_ref,
                       w4_ref, b4_ref,
                       w5_ref, b5_ref,
                       out_ref):
        """One batch tile of the 5-layer MLP decoder, fully resident in VMEM."""

        def linear(h, w_ref, b_ref):
            # Activations cast to the weight dtype (bf16 by default; no-op on
            # the first layer since x is pre-cast in the wrapper).  MXU
            # accumulates in f32; bias add stays f32.
            return jnp.dot(h.astype(w_ref.dtype), w_ref[...],
                           preferred_element_type=jnp.float32,
                           precision=precision) + b_ref[...]

        h = jnp.tanh(linear(x_ref[...], w1_ref, b1_ref))
        h = jnp.tanh(linear(h, w2_ref, b2_ref))
        h = jnp.tanh(linear(h, w3_ref, b3_ref))
        h = jnp.tanh(linear(h, w4_ref, b4_ref))
        out_ref[...] = linear(h, w5_ref, b5_ref).astype(out_ref.dtype)

    return decoder_kernel


def decoder_forward(x, params, *, batch_tile=None, compute_dtype=jnp.bfloat16):
    """x: [B, latent_dim] float32.  params: dict of [in,out] weights / (1,out) biases."""
    B, D_in = x.shape
    assert D_in == params["w1"].shape[0]

    is_v7x, num_cores, vmem_limit = _chip_info()

    in_dims = [params[f"w{i}"].shape[0] for i in range(1, 6)]
    out_dims = [params[f"w{i}"].shape[1] for i in range(1, 6)]
    pin = [_round_up(d, _LANE) for d in in_dims]     # 80->128, 160->256, ...
    pout = [_round_up(d, _LANE) for d in out_dims]   # ..., 64->128
    D_out = out_dims[-1]
    D_in_pad, D_out_pad = pin[0], pout[-1]

    # Zero-pad weights/biases to lane-dense shapes; padded hidden channels
    # stay exactly 0 through tanh (zero weight cols + zero bias) and padded
    # rows contribute nothing (zero weight rows), so the math is unchanged.
    flat_params = []
    for i in range(5):
        w = _pad_2d(params[f"w{i + 1}"], pin[i], pout[i]).astype(compute_dtype)
        b = _pad_2d(params[f"b{i + 1}"], 1, pout[i]).astype(jnp.float32)
        flat_params += [w, b]

    batch_tile = _choose_batch_tile(B, num_cores, batch_tile)
    B_pad = _round_up(B, batch_tile)
    # Cast the input to the compute dtype in the wrapper: halves input DMA
    # bytes for bf16 and removes the first-layer VPU cast inside the kernel.
    x_pad = _pad_2d(x.astype(compute_dtype), B_pad, D_in_pad)

    def full_spec(shape):
        idx_map = lambda i: (0,) * len(shape)
        if is_v7x:
            # Constant index map -> never re-DMA'd across batch tiles; a
            # single buffer saves ~0.5-1 MiB of v7x's 64 MiB VMEM.
            return pl.BlockSpec(shape, idx_map, pipeline_mode=pl.Buffered(1))
        return pl.BlockSpec(shape, idx_map)

    in_specs = [pl.BlockSpec((batch_tile, D_in_pad), lambda i: (i, 0))]
    in_specs += [full_spec(a.shape) for a in flat_params]
    out_spec = pl.BlockSpec((batch_tile, D_out_pad), lambda i: (i, 0))

    # flops reflect padded (actual hardware) work; transcendentals use the
    # real hidden widths (4 x 160 per row), not the padded 256.
    flops = 2 * B_pad * sum(pi * po for pi, po in zip(pin, pout))
    transcendentals = B_pad * sum(out_dims[:4])
    bytes_accessed = (x_pad.size * x_pad.dtype.itemsize
                      + sum(a.size * a.dtype.itemsize for a in flat_params)
                      + B_pad * D_out_pad * 4)
    cost = pl.CostEstimate(flops=int(flops),
                           transcendentals=int(transcendentals),
                           bytes_accessed=int(bytes_accessed))

    # True-f32 requested -> force HIGHEST precision on the bf16 MXU.
    precision = (jax.lax.Precision.HIGHEST
                 if jnp.dtype(compute_dtype) == jnp.dtype(jnp.float32) else None)

    out = pl.pallas_call(
        _make_decoder_kernel(precision),
        out_shape=jax.ShapeDtypeStruct((B_pad, D_out_pad), jnp.float32),
        grid_spec=pltpu.PrefetchScalarGridSpec(
            num_scalar_prefetch=0,
            grid=(B_pad // batch_tile,),
            in_specs=in_specs,
            out_specs=out_spec,
        ),
        compiler_params=pltpu.CompilerParams(
            dimension_semantics=("parallel",),
            vmem_limit_bytes=vmem_limit),
        cost_estimate=cost,
    )(x_pad, *flat_params)

    return out[:B, :D_out]


def init_decoder_params(key,
                        latent_dim=LATENT_DIM,
                        hidden_dim1=HIDDEN_DIM1,
                        hidden_dim2=HIDDEN_DIM2,
                        hidden_dim3=HIDDEN_DIM3,
                        hidden_dim4=HIDDEN_DIM4,
                        output_dim=OUTPUT_DIM):
    """nn.Linear-style init U(-1/sqrt(fan_in), 1/sqrt(fan_in)).

    Weights stored as [in, out] (transposed vs. PyTorch), biases as [1, out].
    """
    dims = [(latent_dim, hidden_dim1),
            (hidden_dim1, hidden_dim2),
            (hidden_dim2, hidden_dim3),
            (hidden_dim3, hidden_dim4),
            (hidden_dim4, output_dim)]
    params = {}
    keys = jax.random.split(key, 2 * len(dims))
    for idx, (fan_in, fan_out) in enumerate(dims):
        bound = 1.0 / jnp.sqrt(jnp.float32(fan_in))
        params[f"w{idx + 1}"] = jax.random.uniform(
            keys[2 * idx], (fan_in, fan_out), dtype=jnp.float32,
            minval=-bound, maxval=bound)
        params[f"b{idx + 1}"] = jax.random.uniform(
            keys[2 * idx + 1], (1, fan_out), dtype=jnp.float32,
            minval=-bound, maxval=bound)
    return params


def decoder_reference(x, params, compute_dtype=jnp.bfloat16):
    """Pure-JAX reference with the same compute-dtype / precision policy."""
    precision = (jax.lax.Precision.HIGHEST
                 if jnp.dtype(compute_dtype) == jnp.dtype(jnp.float32) else None)

    def linear(h, w, b):
        return jnp.dot(h.astype(compute_dtype), w.astype(compute_dtype),
                       preferred_element_type=jnp.float32,
                       precision=precision) + b

    h = jnp.tanh(linear(x, params["w1"], params["b1"]))
    h = jnp.tanh(linear(h, params["w2"], params["b2"]))
    h = jnp.tanh(linear(h, params["w3"], params["b3"]))
    h = jnp.tanh(linear(h, params["w4"], params["b4"]))
    return linear(h, params["w5"], params["b5"])


if __name__ == "__main__":
    key = jax.random.PRNGKey(0)
    pkey, xkey, x2key = jax.random.split(key, 3)

    params = init_decoder_params(pkey)

    # Small deterministic batch.
    batch = 8
    x = jax.random.normal(xkey, (batch, LATENT_DIM), dtype=jnp.float32)

    # Default path: bf16 weights/activations, f32 MXU accumulation.
    out_bf16 = jax.block_until_ready(decoder_forward(x, params))
    ref_bf16 = decoder_reference(x, params, compute_dtype=jnp.bfloat16)
    assert out_bf16.shape == (batch, OUTPUT_DIM)
    assert jnp.allclose(out_bf16, ref_bf16, atol=1e-2, rtol=1e-2), "bf16 mismatch"

    # True-f32 path (precision=HIGHEST on the MXU) vs a matching reference.
    out_f32 = jax.block_until_ready(
        decoder_forward(x, params, compute_dtype=jnp.float32))
    ref_f32 = decoder_reference(x, params, compute_dtype=jnp.float32)
    assert jnp.allclose(out_f32, ref_f32, atol=1e-4, rtol=1e-4), "f32 mismatch"

    # Larger, non-aligned batch to exercise the batch-tiling / padding path
    # (and the >=2-grid-step split on v7x).
    batch2 = 300
    x2 = jax.random.normal(x2key, (batch2, LATENT_DIM), dtype=jnp.float32)
    out2 = jax.block_until_ready(decoder_forward(x2, params))
    ref2 = decoder_reference(x2, params, compute_dtype=jnp.bfloat16)
    assert out2.shape == (batch2, OUTPUT_DIM)
    assert jnp.allclose(out2, ref2, atol=1e-2, rtol=1e-2), "tiled bf16 mismatch"

    print("KERNEL_OK")
</pallas_src>

<mosaic_0001>
module attributes {stable_mosaic.version = 11 : i64} {
  func.func @decoder_kernel(%arg0: i32, %arg1: memref<8x128xbf16, #tpu.memory_space<vmem>>, %arg2: memref<128x256xbf16, #tpu.memory_space<vmem>>, %arg3: memref<1x256xf32, #tpu.memory_space<vmem>>, %arg4: memref<256x256xbf16, #tpu.memory_space<vmem>>, %arg5: memref<1x256xf32, #tpu.memory_space<vmem>>, %arg6: memref<256x256xbf16, #tpu.memory_space<vmem>>, %arg7: memref<1x256xf32, #tpu.memory_space<vmem>>, %arg8: memref<256x256xbf16, #tpu.memory_space<vmem>>, %arg9: memref<1x256xf32, #tpu.memory_space<vmem>>, %arg10: memref<256x128xbf16, #tpu.memory_space<vmem>>, %arg11: memref<1x128xf32, #tpu.memory_space<vmem>>, %arg12: memref<8x128xf32, #tpu.memory_space<vmem>>) attributes {dimension_semantics = [#tpu.dimension_semantics<parallel>], iteration_bounds = array<i64: 1>, scalar_prefetch = 0 : i64, scratch_operands = 0 : i64, tpu.core_type = #tpu.core_type<tc>, window_params = [{transform_indices = @transform_0, window_bounds = array<i64: 8, 128>}, {pipeline_mode = #tpu.pipeline_mode<synchronous>, transform_indices = @transform_1, window_bounds = array<i64: 128, 256>}, {pipeline_mode = #tpu.pipeline_mode<synchronous>, transform_indices = @transform_2, window_bounds = array<i64: 1, 256>}, {pipeline_mode = #tpu.pipeline_mode<synchronous>, transform_indices = @transform_3, window_bounds = array<i64: 256, 256>}, {pipeline_mode = #tpu.pipeline_mode<synchronous>, transform_indices = @transform_4, window_bounds = array<i64: 1, 256>}, {pipeline_mode = #tpu.pipeline_mode<synchronous>, transform_indices = @transform_5, window_bounds = array<i64: 256, 256>}, {pipeline_mode = #tpu.pipeline_mode<synchronous>, transform_indices = @transform_6, window_bounds = array<i64: 1, 256>}, {pipeline_mode = #tpu.pipeline_mode<synchronous>, transform_indices = @transform_7, window_bounds = array<i64: 256, 256>}, {pipeline_mode = #tpu.pipeline_mode<synchronous>, transform_indices = @transform_8, window_bounds = array<i64: 1, 256>}, {pipeline_mode = #tpu.pipeline_mode<synchronous>, transform_indices = @transform_9, window_bounds = array<i64: 256, 128>}, {pipeline_mode = #tpu.pipeline_mode<synchronous>, transform_indices = @transform_10, window_bounds = array<i64: 1, 128>}, {transform_indices = @transform_11, window_bounds = array<i64: 8, 128>}]} {
    %c0 = arith.constant 0 : index
    %c0_0 = arith.constant 0 : index
    %0 = vector.load %arg1[%c0, %c0_0] : memref<8x128xbf16, #tpu.memory_space<vmem>>, vector<8x128xbf16>
    %c0_1 = arith.constant 0 : index
    %c0_2 = arith.constant 0 : index
    %1 = vector.load %arg2[%c0_1, %c0_2] : memref<128x256xbf16, #tpu.memory_space<vmem>>, vector<128x256xbf16>
    %cst = arith.constant dense<0.000000e+00> : vector<8x256xf32>
    %2 = tpu.matmul %0, %1, %cst {dimension_numbers = #tpu.dot_dimension_numbers<[1], [0], [0], [1], [0, 0, 1, 1], [], []>} : vector<8x128xbf16>, vector<128x256xbf16>, vector<8x256xf32> -> vector<8x256xf32>
    %c0_3 = arith.constant 0 : index
    %c0_4 = arith.constant 0 : index
    %3 = vector.load %arg3[%c0_3, %c0_4] : memref<1x256xf32, #tpu.memory_space<vmem>>, vector<1x256xf32>
    %4 = vector.broadcast %3 : vector<1x256xf32> to vector<8x256xf32>
    %5 = arith.addf %2, %4 : vector<8x256xf32>
    %6 = math.tanh %5 : vector<8x256xf32>
    %7 = arith.truncf %6 : vector<8x256xf32> to vector<8x256xbf16>
    %c0_5 = arith.constant 0 : index
    %c0_6 = arith.constant 0 : index
    %8 = vector.load %arg4[%c0_5, %c0_6] : memref<256x256xbf16, #tpu.memory_space<vmem>>, vector<256x256xbf16>
    %cst_7 = arith.constant dense<0.000000e+00> : vector<8x256xf32>
    %9 = tpu.matmul %7, %8, %cst_7 {dimension_numbers = #tpu.dot_dimension_numbers<[1], [0], [0], [1], [0, 0, 1, 1], [], []>} : vector<8x256xbf16>, vector<256x256xbf16>, vector<8x256xf32> -> vector<8x256xf32>
    %c0_8 = arith.constant 0 : index
    %c0_9 = arith.constant 0 : index
    %10 = vector.load %arg5[%c0_8, %c0_9] : memref<1x256xf32, #tpu.memory_space<vmem>>, vector<1x256xf32>
    %11 = vector.broadcast %10 : vector<1x256xf32> to vector<8x256xf32>
    %12 = arith.addf %9, %11 : vector<8x256xf32>
    %13 = math.tanh %12 : vector<8x256xf32>
    %14 = arith.truncf %13 : vector<8x256xf32> to vector<8x256xbf16>
    %c0_10 = arith.constant 0 : index
    %c0_11 = arith.constant 0 : index
    %15 = vector.load %arg6[%c0_10, %c0_11] : memref<256x256xbf16, #tpu.memory_space<vmem>>, vector<256x256xbf16>
    %cst_12 = arith.constant dense<0.000000e+00> : vector<8x256xf32>
    %16 = tpu.matmul %14, %15, %cst_12 {dimension_numbers = #tpu.dot_dimension_numbers<[1], [0], [0], [1], [0, 0, 1, 1], [], []>} : vector<8x256xbf16>, vector<256x256xbf16>, vector<8x256xf32> -> vector<8x256xf32>
    %c0_13 = arith.constant 0 : index
    %c0_14 = arith.constant 0 : index
    %17 = vector.load %arg7[%c0_13, %c0_14] : memref<1x256xf32, #tpu.memory_space<vmem>>, vector<1x256xf32>
    %18 = vector.broadcast %17 : vector<1x256xf32> to vector<8x256xf32>
    %19 = arith.addf %16, %18 : vector<8x256xf32>
    %20 = math.tanh %19 : vector<8x256xf32>
    %21 = arith.truncf %20 : vector<8x256xf32> to vector<8x256xbf16>
    %c0_15 = arith.constant 0 : index
    %c0_16 = arith.constant 0 : index
    %22 = vector.load %arg8[%c0_15, %c0_16] : memref<256x256xbf16, #tpu.memory_space<vmem>>, vector<256x256xbf16>
    %cst_17 = arith.constant dense<0.000000e+00> : vector<8x256xf32>
    %23 = tpu.matmul %21, %22, %cst_17 {dimension_numbers = #tpu.dot_dimension_numbers<[1], [0], [0], [1], [0, 0, 1, 1], [], []>} : vector<8x256xbf16>, vector<256x256xbf16>, vector<8x256xf32> -> vector<8x256xf32>
    %c0_18 = arith.constant 0 : index
    %c0_19 = arith.constant 0 : index
    %24 = vector.load %arg9[%c0_18, %c0_19] : memref<1x256xf32, #tpu.memory_space<vmem>>, vector<1x256xf32>
    %25 = vector.broadcast %24 : vector<1x256xf32> to vector<8x256xf32>
    %26 = arith.addf %23, %25 : vector<8x256xf32>
    %27 = math.tanh %26 : vector<8x256xf32>
    %28 = arith.truncf %27 : vector<8x256xf32> to vector<8x256xbf16>
    %c0_20 = arith.constant 0 : index
    %c0_21 = arith.constant 0 : index
    %29 = vector.load %arg10[%c0_20, %c0_21] : memref<256x128xbf16, #tpu.memory_space<vmem>>, vector<256x128xbf16>
    %cst_22 = arith.constant dense<0.000000e+00> : vector<8x128xf32>
    %30 = tpu.matmul %28, %29, %cst_22 {dimension_numbers = #tpu.dot_dimension_numbers<[1], [0], [0], [1], [0, 0, 1, 1], [], []>} : vector<8x256xbf16>, vector<256x128xbf16>, vector<8x128xf32> -> vector<8x128xf32>
    %c0_23 = arith.constant 0 : index
    %c0_24 = arith.constant 0 : index
    %31 = vector.load %arg11[%c0_23, %c0_24] : memref<1x128xf32, #tpu.memory_space<vmem>>, vector<1x128xf32>
    %32 = vector.broadcast %31 : vector<1x128xf32> to vector<8x128xf32>
    %33 = arith.addf %30, %32 : vector<8x128xf32>
    %c0_25 = arith.constant 0 : index
    %c0_26 = arith.constant 0 : index
    %34 = vector.load %arg12[%c0_25, %c0_26] : memref<8x128xf32, #tpu.memory_space<vmem>>, vector<8x128xf32>
    tpu.vector_store %arg12[%c0_25, %c0_26], %33 {strides = array<i32>} : memref<8x128xf32, #tpu.memory_space<vmem>>, vector<8x128xf32>,
    return
  }
  func.func @transform_0(%arg0: i32) -> (i32, i32) {
    %c0_i32 = arith.constant 0 : i32
    %c0_i32_0 = arith.constant 0 : i32
    return %arg0, %c0_i32 : i32, i32
  }
  func.func @transform_1(%arg0: i32) -> (i32, i32) {
    %c0_i32 = arith.constant 0 : i32
    %c0_i32_0 = arith.constant 0 : i32
    %c0_i32_1 = arith.constant 0 : i32
    return %c0_i32, %c0_i32_0 : i32, i32
  }
  func.func @transform_2(%arg0: i32) -> (i32, i32) {
    %c0_i32 = arith.constant 0 : i32
    %c0_i32_0 = arith.constant 0 : i32
    %c0_i32_1 = arith.constant 0 : i32
    return %c0_i32, %c0_i32_0 : i32, i32
  }
  func.func @transform_3(%arg0: i32) -> (i32, i32) {
    %c0_i32 = arith.constant 0 : i32
    %c0_i32_0 = arith.constant 0 : i32
    %c0_i32_1 = arith.constant 0 : i32
    return %c0_i32, %c0_i32_0 : i32, i32
  }
  func.func @transform_4(%arg0: i32) -> (i32, i32) {
    %c0_i32 = arith.constant 0 : i32
    %c0_i32_0 = arith.constant 0 : i32
    %c0_i32_1 = arith.constant 0 : i32
    return %c0_i32, %c0_i32_0 : i32, i32
  }
  func.func @transform_5(%arg0: i32) -> (i32, i32) {
    %c0_i32 = arith.constant 0 : i32
    %c0_i32_0 = arith.constant 0 : i32
    %c0_i32_1 = arith.constant 0 : i32
    return %c0_i32, %c0_i32_0 : i32, i32
  }
  func.func @transform_6(%arg0: i32) -> (i32, i32) {
    %c0_i32 = arith.constant 0 : i32
    %c0_i32_0 = arith.constant 0 : i32
    %c0_i32_1 = arith.constant 0 : i32
    return %c0_i32, %c0_i32_0 : i32, i32
  }
  func.func @transform_7(%arg0: i32) -> (i32, i32) {
    %c0_i32 = arith.constant 0 : i32
    %c0_i32_0 = arith.constant 0 : i32
    %c0_i32_1 = arith.constant 0 : i32
    return %c0_i32, %c0_i32_0 : i32, i32
  }
  func.func @transform_8(%arg0: i32) -> (i32, i32) {
    %c0_i32 = arith.constant 0 : i32
    %c0_i32_0 = arith.constant 0 : i32
    %c0_i32_1 = arith.constant 0 : i32
    return %c0_i32, %c0_i32_0 : i32, i32
  }
  func.func @transform_9(%arg0: i32) -> (i32, i32) {
    %c0_i32 = arith.constant 0 : i32
    %c0_i32_0 = arith.constant 0 : i32
    %c0_i32_1 = arith.constant 0 : i32
    return %c0_i32, %c0_i32_0 : i32, i32
  }
  func.func @transform_10(%arg0: i32) -> (i32, i32) {
    %c0_i32 = arith.constant 0 : i32
    %c0_i32_0 = arith.constant 0 : i32
    %c0_i32_1 = arith.constant 0 : i32
    return %c0_i32, %c0_i32_0 : i32, i32
  }
  func.func @transform_11(%arg0: i32) -> (i32, i32) {
    %c0_i32 = arith.constant 0 : i32
    %c0_i32_0 = arith.constant 0 : i32
    return %arg0, %c0_i32 : i32, i32
  }
}

</mosaic_0001>

<bundles_post_ra>
// kernel: tpu_custom_call.1
= control target key start
LH: loop header
LB: loop body
LE: loop exit
PB: predicated region body
PF: predicated region fallthrough
CT: control target
= control target key end

     0   :  { %16 = vsyncpa [#allocation3], 0  ;;  %s2165_s0 = inlined_call_operand.hbm [shape: bf16[8,128], index: 0, kind: input, shape index: {}]   ;;  %s2166_s1 = inlined_call_operand.hbm [shape: bf16[128,256], index: 1, kind: input, shape index: {}]   ;;  %s2167_s2 = inlined_call_operand.hbm [shape: f32[1,256], index: 2, kind: input, shape index: {}]   ;;  %s2168_s3 = inlined_call_operand.hbm [shape: bf16[256,256], index: 3, kind: input, shape index: {}]   ;;  %s2169_s4 = inlined_call_operand.hbm [shape: f32[1,256], index: 4, kind: input, shape index: {}]   ;;  %s2170_s5 = inlined_call_operand.hbm [shape: bf16[256,256], index: 5, kind: input, shape index: {}]   ;;  %s2171_s6 = inlined_call_operand.hbm [shape: f32[1,256], index: 6, kind: input, shape index: {}]   ;;  %s2172_s7 = inlined_call_operand.hbm [shape: bf16[256,256], index: 7, kind: input, shape index: {}]   ;;  %s2173_s8 = inlined_call_operand.hbm [shape: f32[1,256], index: 8, kind: input, shape index: {}]   ;;  %s2174_s9 = inlined_call_operand.hbm [shape: bf16[256,128], index: 9, kind: input, shape index: {}]   ;;  %s2175_s10 = inlined_call_operand.hbm [shape: f32[1,128], index: 10, kind: input, shape index: {}]   ;;  %s2176_s11 = inlined_call_operand.hbm [shape: f32[8,128], index: 11, kind: output, shape index: {}]  }
   0x1   :  { %17 = vsyncpa [#allocation6], 0 }
   0x2   :  { %18 = vsyncpa [#allocation9], 0 }
   0x3   :  { %19 = vsyncpa [#allocation12], 0 }
   0x4   :  { %20 = vsyncpa [#allocation15], 0 }
   0x5   :  { %21 = vsyncpa [#allocation18], 0 }
   0x6   :  { %22 = vsyncpa [#allocation4], 0  ;;  %s1920_s17 = smov [#allocation5]   ;;  %s1642_s21 = scalar_lea.hbm %s2166_s1, 2048 }
   0x7   :  { %s38_s18 = sshll.u32 %s1920_s17, 4  ;;  %p1643_p0 = scmp.ne.s32.totalorder %s2166_s1, %s1642_s21  ;;  %s39_s18 = int_to_ptr.vmem [resolvable:$true] %s38_s18 }
   0x8   :  { %p1646_p1 = scmp.lt.u32.totalorder %s1642_s21, %s2166_s1 }
   0xa   :  { %p1648_p2 = pnand %p1646_p1, %p1643_p0 }
   0xc   :  { %1651 = shalt.err (!%p1648_p2)
}
   0xd   :  { %s1652_s26 = scalar_lea.vmem %s39_s18, 2048  ;;  %p1657_p4 = scmp.lt.s32.totalorder %s39_s18, %s39_s18 }
   0xe   :  { %p1653_p3 = scmp.ne.s32.totalorder %s39_s18, %s1652_s26  ;;  %p1658_p5 = scmp.lt.s32.totalorder %s1652_s26, %s1652_s26 }
  0x10   :  { %p1659_p6 = por %p1658_p5, %p1657_p4 }
  0x12   :  { %p1660_p7 = pnand %p1659_p6, %p1653_p3 }
  0x14   :  { %1663 = shalt.err (!%p1660_p7)
}
  0x15   :  { %s1921_s27 = smov 128   ;;  %s1922_s28 = smov 8  }
  0x16   :  { %44 = dma.hbm_to_vmem [thread:$0]  %s2166_s1, 2048, %s39_s18, [#allocation6], %s1921_s27, %s1921_s27, %s1922_s28  }
  0x17   :  { %s1923_s12 = smov [#allocation8]   ;;  %s1924_s14 = smov [#allocation11]  }
  0x18   :  { %s60_s13 = sshll.u32 %s1923_s12, 4  ;;  %s82_s15 = sshll.u32 %s1924_s14, 4  ;;  %s61_s13 = int_to_ptr.vmem [resolvable:$true] %s60_s13  ;;  %s83_s15 = int_to_ptr.vmem [resolvable:$true] %s82_s15 }
  0x19   :  { %s1664_s19 = scalar_lea.hbm %s2168_s3, 4096 }
  0x1a   :  { %p1665_p8 = scmp.ne.s32.totalorder %s2168_s3, %s1664_s19  ;;  %p1668_p9 = scmp.lt.u32.totalorder %s1664_s19, %s2168_s3 }
  0x1c   :  { %p1670_p10 = pnand %p1668_p9, %p1665_p8 }
  0x1e   :  { %1673 = shalt.err (!%p1670_p10)
}
  0x1f   :  { %s1674_s1 = scalar_lea.vmem %s61_s13, 4096  ;;  %p1679_p12 = scmp.lt.s32.totalorder %s61_s13, %s61_s13 }
  0x20   :  { %p1675_p11 = scmp.ne.s32.totalorder %s61_s13, %s1674_s1  ;;  %p1680_p13 = scmp.lt.s32.totalorder %s1674_s1, %s1674_s1 }
  0x22   :  { %p1681_p0 = por %p1680_p13, %p1679_p12 }
  0x24   :  { %p1682_p1 = pnand %p1681_p0, %p1675_p11 }
  0x26   :  { %1685 = shalt.err (!%p1682_p1)
}
  0x27   :  { %66 = dma.hbm_to_vmem [thread:$0]  %s2168_s3, 4096, %s61_s13, [#allocation9], %s1921_s27, %s1921_s27, %s1922_s28  }
  0x28   :  { %s1686_s29 = scalar_lea.hbm %s2170_s5, 4096 }
  0x29   :  { %p1687_p2 = scmp.ne.s32.totalorder %s2170_s5, %s1686_s29  ;;  %p1690_p3 = scmp.lt.u32.totalorder %s1686_s29, %s2170_s5 }
  0x2b   :  { %p1692_p4 = pnand %p1690_p3, %p1687_p2 }
  0x2d   :  { %1695 = shalt.err (!%p1692_p4)
}
  0x2e   :  { %s1696_s17 = scalar_lea.vmem %s83_s15, 4096  ;;  %p1701_p6 = scmp.lt.s32.totalorder %s83_s15, %s83_s15 }
  0x2f   :  { %p1697_p5 = scmp.ne.s32.totalorder %s83_s15, %s1696_s17  ;;  %p1702_p7 = scmp.lt.s32.totalorder %s1696_s17, %s1696_s17 }
  0x31   :  { %p1703_p8 = por %p1702_p7, %p1701_p6 }
  0x33   :  { %p1704_p9 = pnand %p1703_p8, %p1697_p5 }
  0x35   :  { %1707 = shalt.err (!%p1704_p9)
}
  0x36   :  { %88 = dma.hbm_to_vmem [thread:$0]  %s2170_s5, 4096, %s83_s15, [#allocation12], %s1921_s27, %s1921_s27, %s1922_s28  }
  0x37   :  { %s1925_s19 = smov [#allocation14]   ;;  %s1926_s21 = smov [#allocation17]  }
  0x38   :  { %s104_s20 = sshll.u32 %s1925_s19, 4  ;;  %s126_s22 = sshll.u32 %s1926_s21, 4  ;;  %s105_s20 = int_to_ptr.vmem [resolvable:$true] %s104_s20  ;;  %s127_s22 = int_to_ptr.vmem [resolvable:$true] %s126_s22 }
  0x39   :  { %s1708_s18 = scalar_lea.hbm %s2172_s7, 4096 }
  0x3a   :  { %p1709_p10 = scmp.ne.s32.totalorder %s2172_s7, %s1708_s18  ;;  %p1712_p11 = scmp.lt.u32.totalorder %s1708_s18, %s2172_s7 }
  0x3c   :  { %p1714_p12 = pnand %p1712_p11, %p1709_p10 }
  0x3e   :  { %1717 = shalt.err (!%p1714_p12)
}
  0x3f   :  { %s1718_s5 = scalar_lea.vmem %s105_s20, 4096  ;;  %p1723_p0 = scmp.lt.s32.totalorder %s105_s20, %s105_s20 }
  0x40   :  { %p1719_p13 = scmp.ne.s32.totalorder %s105_s20, %s1718_s5  ;;  %p1724_p1 = scmp.lt.s32.totalorder %s1718_s5, %s1718_s5 }
  0x42   :  { %p1725_p2 = por %p1724_p1, %p1723_p0 }
  0x44   :  { %p1726_p3 = pnand %p1725_p2, %p1719_p13 }
  0x46   :  { %1729 = shalt.err (!%p1726_p3)
}
  0x47   :  { %110 = dma.hbm_to_vmem [thread:$0]  %s2172_s7, 4096, %s105_s20, [#allocation15], %s1921_s27, %s1921_s27, %s1922_s28  }
  0x48   :  { %s1730_s16 = scalar_lea.hbm %s2174_s9, 2048 }
  0x49   :  { %p1731_p4 = scmp.ne.s32.totalorder %s2174_s9, %s1730_s16  ;;  %p1734_p5 = scmp.lt.u32.totalorder %s1730_s16, %s2174_s9 }
  0x4b   :  { %p1736_p6 = pnand %p1734_p5, %p1731_p4 }
  0x4d   :  { %1739 = shalt.err (!%p1736_p6)
}
  0x4e   :  { %s1740_s21 = scalar_lea.vmem %s127_s22, 2048  ;;  %p1745_p8 = scmp.lt.s32.totalorder %s127_s22, %s127_s22 }
  0x4f   :  { %p1741_p7 = scmp.ne.s32.totalorder %s127_s22, %s1740_s21  ;;  %p1746_p9 = scmp.lt.s32.totalorder %s1740_s21, %s1740_s21 }
  0x51   :  { %p1747_p10 = por %p1746_p9, %p1745_p8 }
  0x53   :  { %p1748_p11 = pnand %p1747_p10, %p1741_p7 }
  0x55   :  { %1751 = shalt.err (!%p1748_p11)
}
  0x56   :  { %s1927_s7 = smov 64   ;;  %s1928_s27 = smov 4  }
  0x57   :  { %132 = dma.hbm_to_vmem [thread:$0]  %s2174_s9, 2048, %s127_s22, [#allocation18], %s1927_s7, %s1927_s7, %s1928_s27  }
  0x58   :  { %s1929_s23 = smov [#allocation2]   ;;  %s1930_s18 = smov [#allocation7]  }
  0x59   :  { %s29_s1 = sshll.u32 %s1929_s23, 4  ;;  %s51_s24 = sshll.u32 %s1930_s18, 4  ;;  %s30_s1 = int_to_ptr.vmem [resolvable:$true] %s29_s1  ;;  %s52_s24 = int_to_ptr.vmem [resolvable:$true] %s51_s24 }
  0x5a   :  { %s1752_s29 = scalar_lea.hbm %s2165_s0, 64 }
  0x5b   :  { %p1753_p12 = scmp.ne.s32.totalorder %s2165_s0, %s1752_s29  ;;  %p1756_p13 = scmp.lt.u32.totalorder %s1752_s29, %s2165_s0 }
  0x5d   :  { %p1758_p0 = pnand %p1756_p13, %p1753_p12 }
  0x5f   :  { %1761 = shalt.err (!%p1758_p0)
}
  0x60   :  { %s1762_s9 = scalar_lea.vmem %s30_s1, 64  ;;  %p1767_p2 = scmp.lt.s32.totalorder %s30_s1, %s30_s1 }
  0x61   :  { %p1763_p1 = scmp.ne.s32.totalorder %s30_s1, %s1762_s9  ;;  %p1768_p3 = scmp.lt.s32.totalorder %s1762_s9, %s1762_s9 }
  0x63   :  { %p1769_p4 = por %p1768_p3, %p1767_p2 }
  0x65   :  { %p1770_p5 = pnand %p1769_p4, %p1763_p1 }
  0x67   :  { %1773 = shalt.err (!%p1770_p5)
}
  0x68   :  { %32 = dma.hbm_to_vmem [thread:$0]  %s2165_s0, 64, %s30_s1, [#allocation3]  }
  0x69   :  { %s1774_s3 = scalar_lea.hbm %s2167_s2, 32 }
  0x6a   :  { %p1775_p6 = scmp.ne.s32.totalorder %s2167_s2, %s1774_s3  ;;  %p1778_p7 = scmp.lt.u32.totalorder %s1774_s3, %s2167_s2 }
  0x6c   :  { %p1780_p8 = pnand %p1778_p7, %p1775_p6 }
  0x6e   :  { %1783 = shalt.err (!%p1780_p8)
}
  0x6f   :  { %s1784_s27 = scalar_lea.vmem %s52_s24, 32  ;;  %p1789_p10 = scmp.lt.s32.totalorder %s52_s24, %s52_s24 }
  0x70   :  { %p1785_p9 = scmp.ne.s32.totalorder %s52_s24, %s1784_s27  ;;  %p1790_p11 = scmp.lt.s32.totalorder %s1784_s27, %s1784_s27 }
  0x72   :  { %p1791_p12 = por %p1790_p11, %p1789_p10 }
  0x74   :  { %p1792_p13 = pnand %p1791_p12, %p1785_p9 }
  0x76   :  { %1795 = shalt.err (!%p1792_p13)
}
  0x77   :  { %54 = dma.hbm_to_vmem [thread:$0]  %s2167_s2, 32, %s52_s24, [#allocation6]  }
  0x78   :  { %s1931_s20 = smov [#allocation10]   ;;  %s1932_s1 = smov [#allocation13]  }
  0x79   :  { %s73_s23 = sshll.u32 %s1931_s20, 4  ;;  %s95_s18 = sshll.u32 %s1932_s1, 4  ;;  %s74_s23 = int_to_ptr.vmem [resolvable:$true] %s73_s23  ;;  %s96_s18 = int_to_ptr.vmem [resolvable:$true] %s95_s18 }
  0x7a   :  { %s1796_s29 = scalar_lea.hbm %s2169_s4, 32 }
  0x7b   :  { %p1797_p0 = scmp.ne.s32.totalorder %s2169_s4, %s1796_s29  ;;  %p1800_p1 = scmp.lt.u32.totalorder %s1796_s29, %s2169_s4 }
  0x7d   :  { %p1802_p2 = pnand %p1800_p1, %p1797_p0 }
  0x7f   :  { %1805 = shalt.err (!%p1802_p2)
}
  0x80   :  { %s1806_s2 = scalar_lea.vmem %s74_s23, 32  ;;  %p1811_p4 = scmp.lt.s32.totalorder %s74_s23, %s74_s23 }
  0x81   :  { %p1807_p3 = scmp.ne.s32.totalorder %s74_s23, %s1806_s2  ;;  %p1812_p5 = scmp.lt.s32.totalorder %s1806_s2, %s1806_s2 }
  0x83   :  { %p1813_p6 = por %p1812_p5, %p1811_p4 }
  0x85   :  { %p1814_p7 = pnand %p1813_p6, %p1807_p3 }
  0x87   :  { %1817 = shalt.err (!%p1814_p7)
}
  0x88   :  { %76 = dma.hbm_to_vmem [thread:$0]  %s2169_s4, 32, %s74_s23, [#allocation9]  }
  0x89   :  { %s1818_s16 = scalar_lea.hbm %s2171_s6, 32 }
  0x8a   :  { %p1819_p8 = scmp.ne.s32.totalorder %s2171_s6, %s1818_s16  ;;  %p1822_p9 = scmp.lt.u32.totalorder %s1818_s16, %s2171_s6 }
  0x8c   :  { %p1824_p10 = pnand %p1822_p9, %p1819_p8 }
  0x8e   :  { %1827 = shalt.err (!%p1824_p10)
}
  0x8f   :  { %s1828_s21 = scalar_lea.vmem %s96_s18, 32  ;;  %p1833_p12 = scmp.lt.s32.totalorder %s96_s18, %s96_s18 }
  0x90   :  { %p1829_p11 = scmp.ne.s32.totalorder %s96_s18, %s1828_s21  ;;  %p1834_p13 = scmp.lt.s32.totalorder %s1828_s21, %s1828_s21 }
  0x92   :  { %p1835_p0 = por %p1834_p13, %p1833_p12 }
  0x94   :  { %p1836_p1 = pnand %p1835_p0, %p1829_p11 }
  0x96   :  { %1839 = shalt.err (!%p1836_p1)
}
  0x97   :  { %98 = dma.hbm_to_vmem [thread:$0]  %s2171_s6, 32, %s96_s18, [#allocation12]  }
  0x98   :  { %s1933_s27 = smov [#allocation16]   ;;  %s1934_s28 = smov [#allocation19]  }
  0x99   :  { %s117_s0 = sshll.u32 %s1933_s27, 4  ;;  %s139_s20 = sshll.u32 %s1934_s28, 4  ;;  %s118_s0 = int_to_ptr.vmem [resolvable:$true] %s117_s0  ;;  %s140_s20 = int_to_ptr.vmem [resolvable:$true] %s139_s20 }
  0x9a   :  { %s1840_s25 = scalar_lea.hbm %s2173_s8, 32 }
  0x9b   :  { %p1841_p2 = scmp.ne.s32.totalorder %s2173_s8, %s1840_s25  ;;  %p1844_p3 = scmp.lt.u32.totalorder %s1840_s25, %s2173_s8 }
  0x9d   :  { %p1846_p4 = pnand %p1844_p3, %p1841_p2 }
  0x9f   :  { %1849 = shalt.err (!%p1846_p4)
}
  0xa0   :  { %s1850_s6 = scalar_lea.vmem %s118_s0, 32  ;;  %p1855_p6 = scmp.lt.s32.totalorder %s118_s0, %s118_s0 }
  0xa1   :  { %p1851_p5 = scmp.ne.s32.totalorder %s118_s0, %s1850_s6  ;;  %p1856_p7 = scmp.lt.s32.totalorder %s1850_s6, %s1850_s6 }
  0xa3   :  { %p1857_p8 = por %p1856_p7, %p1855_p6 }
  0xa5   :  { %p1858_p9 = pnand %p1857_p8, %p1851_p5 }
  0xa7   :  { %1861 = shalt.err (!%p1858_p9)
}
  0xa8   :  { %120 = dma.hbm_to_vmem [thread:$0]  %s2173_s8, 32, %s118_s0, [#allocation15]  }
  0xa9   :  { %s1862_s24 = scalar_lea.hbm %s2175_s10, 16 }
  0xaa   :  { %p1863_p10 = scmp.ne.s32.totalorder %s2175_s10, %s1862_s24  ;;  %p1866_p11 = scmp.lt.u32.totalorder %s1862_s24, %s2175_s10 }
  0xac   :  { %p1868_p12 = pnand %p1866_p11, %p1863_p10 }
  0xae   :  { %1871 = shalt.err (!%p1868_p12)
}
  0xaf   :  { %s1872_s17 = scalar_lea.vmem %s140_s20, 16  ;;  %s1876_s3 = scalar_lea.vmem %s140_s20, 32 }
  0xb0   :  { %p1873_p13 = scmp.ne.s32.totalorder %s140_s20, %s1872_s17  ;;  %p1877_p0 = scmp.lt.s32.totalorder %s140_s20, %s140_s20 }
  0xb1   :  { %p1878_p1 = scmp.lt.s32.totalorder %s1876_s3, %s1872_s17 }
  0xb3   :  { %p1879_p2 = por %p1878_p1, %p1877_p0 }
  0xb5   :  { %p1880_p3 = pnand %p1879_p2, %p1873_p13 }
  0xb7   :  { %1883 = shalt.err (!%p1880_p3)
}
  0xb8   :  { %142 = dma.hbm_to_vmem [thread:$0]  %s2175_s10, 16, %s140_s20, [#allocation18]  }
  0xb9   :  { %1906 = dma.done.wait [#allocation3], 64  }
  0xba   :  { %1907 = vsyncadd [#allocation3], 4294967232 }
  0xbb   :  { %1908 = dma.done.wait [#allocation6], 2080  }
  0xbc   :  { %1909 = vsyncadd [#allocation6], 4294965216 }
  0xbd   :  { %1910 = dma.done.wait [#allocation9], 4128  }
  0xbe   :  { %1911 = vsyncadd [#allocation9], 4294963168 }
  0xbf   :  { %1912 = dma.done.wait [#allocation12], 4128  }
  0xc0   :  { %1913 = vsyncadd [#allocation12], 4294963168 }
  0xc1   :  { %1914 = dma.done.wait [#allocation15], 4128  }
  0xc2   :  { %1915 = vsyncadd [#allocation15], 4294963168 }
  0xc3   :  { %1916 = dma.done.wait [#allocation18], 2064  }
  0xc4   :  { %1917 = vsyncadd [#allocation18], 4294965232  ;;  %v1935_v0 = vmov 0   ;;  %v1442_v1 = vld [vmem:[#allocation5 + $0x4] ss:$8 sps:$4 sm:$0xff]   ;;  %s1936_s10 = smov [#allocation20]  }
  0xc5   :  { %318 = vmatprep.mubr.bf16.mxu0 %v1935_v0  ;;  %v1444_v2 = vld [vmem:[#allocation5] ss:$8 sps:$4 sm:$0xff]   ;;  %286 = vmatprep.subr.bf16.mxu0 %v1442_v1  ;;  %v1445_v3 = vld [vmem:[#allocation5 + $0x14] ss:$8 sps:$4 sm:$0xff]   ;;  %v1447_v4 = vld [vmem:[#allocation5 + $0x10] ss:$8 sps:$4 sm:$0xff]  }
  0xc6   :  { %287 = vmatpush1.bf16.msra.mxu0 %v1444_v2  ;;  %v1448_v5 = vld [vmem:[#allocation5 + $0x24] ss:$8 sps:$4 sm:$0xff]   ;;  %v1450_v6 = vld [vmem:[#allocation5 + $0x20] ss:$8 sps:$4 sm:$0xff]   ;;  %v1451_v7 = vld [vmem:[#allocation5 + $0x34] ss:$8 sps:$4 sm:$0xff]  }
  0xc7   :  { %288 = vmatprep.subr.bf16.mxu0 %v1445_v3  ;;  %v1453_v8 = vld [vmem:[#allocation5 + $0x30] ss:$8 sps:$4 sm:$0xff]   ;;  %v1454_v9 = vld [vmem:[#allocation5 + $0x44] ss:$8 sps:$4 sm:$0xff]   ;;  %v1456_v13 = vld [vmem:[#allocation5 + $0x40] ss:$8 sps:$4 sm:$0xff]  }
  0xc8   :  { %v1466_v10 = vld [vmem:[#allocation8 + $0x4] ss:$8 sps:$4 sm:$0xff]   ;;  %v1468_v11 = vld [vmem:[#allocation8] ss:$8 sps:$4 sm:$0xff]   ;;  %v1469_v12 = vld [vmem:[#allocation8 + $0x14] ss:$8 sps:$4 sm:$0xff]  }
  0xc9   :  { %535 = vmatprep.subr.bf16.mxu1 %v1466_v10  ;;  %v1471_v14 = vld [vmem:[#allocation8 + $0x10] ss:$8 sps:$4 sm:$0xff]   ;;  %v1472_v15 = vld [vmem:[#allocation8 + $0x24] ss:$8 sps:$4 sm:$0xff]   ;;  %v1474_v18 = vld [vmem:[#allocation8 + $0x20] ss:$8 sps:$4 sm:$0xff]   ;;  %v196_v10 = vlaneseq }
  0xca   :  { %289 = vmatpush1.bf16.msra.mxu0 %v1447_v4  ;;  %536 = vmatpush1.bf16.msra.mxu1 %v1468_v11  ;;  %v1457_v16 = vld [vmem:[#allocation5 + $0x54] ss:$8 sps:$4 sm:$0xff]   ;;  %v1459_v17 = vld [vmem:[#allocation5 + $0x50] ss:$8 sps:$4 sm:$0xff]   ;;  %v1460_v20 = vld [vmem:[#allocation5 + $0x64] ss:$8 sps:$4 sm:$0xff]  }
  0xcb   :  { %290 = vmatprep.subr.bf16.mxu0 %v1448_v5  ;;  %537 = vmatprep.subr.bf16.mxu1 %v1469_v12  ;;  %v1475_v19 = vld [vmem:[#allocation8 + $0x34] ss:$8 sps:$4 sm:$0xff]   ;;  %v1477_v22 = vld [vmem:[#allocation8 + $0x30] ss:$8 sps:$4 sm:$0xff]   ;;  %v1478_v23 = vld [vmem:[#allocation8 + $0x44] ss:$8 sps:$4 sm:$0xff]  }
  0xcc   :  { %v1462_v21 = vld [vmem:[#allocation5 + $0x60] ss:$8 sps:$4 sm:$0xff]   ;;  %v1463_v24 = vld [vmem:[#allocation5 + $0x74] ss:$8 sps:$4 sm:$0xff]   ;;  %v1465_v25 = vld [vmem:[#allocation5 + $0x70] ss:$8 sps:$4 sm:$0xff]  }
  0xcd   :  { %v1480_v26 = vld [vmem:[#allocation8 + $0x40] ss:$8 sps:$4 sm:$0xff]   ;;  %v1481_v27 = vld [vmem:[#allocation8 + $0x54] ss:$8 sps:$4 sm:$0xff]   ;;  %v1483_v28 = vld [vmem:[#allocation8 + $0x50] ss:$8 sps:$4 sm:$0xff]  }
  0xce   :  { %291 = vmatpush1.bf16.msra.mxu0 %v1450_v6  ;;  %538 = vmatpush1.bf16.msra.mxu1 %v1471_v14  ;;  %v177_v29 = vld [vmem:[#allocation2] sm:$0xf]  ;;  %v1484_v30 = vld [vmem:[#allocation8 + $0x64] ss:$8 sps:$4 sm:$0xff]   ;;  %v1486_v31 = vld [vmem:[#allocation8 + $0x60] ss:$8 sps:$4 sm:$0xff]  }
  0xcf   :  { %292 = vmatprep.subr.bf16.mxu0 %v1451_v7  ;;  %539 = vmatprep.subr.bf16.mxu1 %v1472_v15  ;;  %v1487_v32 = vld [vmem:[#allocation8 + $0x74] ss:$8 sps:$4 sm:$0xff]   ;;  %v1489_v33 = vld [vmem:[#allocation8 + $0x70] ss:$8 sps:$4 sm:$0xff]   ;;  %v1490_v34 = vld [vmem:[#allocation8 + $0x84] ss:$8 sps:$4 sm:$0xff]  }
  0xd0   :  { %v1492_v35 = vld [vmem:[#allocation8 + $0x80] ss:$8 sps:$4 sm:$0xff]   ;;  %v1493_v36 = vld [vmem:[#allocation8 + $0x94] ss:$8 sps:$4 sm:$0xff]   ;;  %v1495_v37 = vld [vmem:[#allocation8 + $0x90] ss:$8 sps:$4 sm:$0xff]  }
  0xd1   :  { %v1496_v38 = vld [vmem:[#allocation8 + $0xa4] ss:$8 sps:$4 sm:$0xff]   ;;  %v1498_v39 = vld [vmem:[#allocation8 + $0xa0] ss:$8 sps:$4 sm:$0xff]   ;;  %v1499_v40 = vld [vmem:[#allocation8 + $0xb4] ss:$8 sps:$4 sm:$0xff]  }
  0xd2   :  { %293 = vmatpush1.bf16.msra.mxu0 %v1453_v8  ;;  %540 = vmatpush1.bf16.msra.mxu1 %v1474_v18  ;;  %v1501_v41 = vld [vmem:[#allocation8 + $0xb0] ss:$8 sps:$4 sm:$0xff]   ;;  %v1502_v42 = vld [vmem:[#allocation8 + $0xc4] ss:$8 sps:$4 sm:$0xff]   ;;  %v1504_v43 = vld [vmem:[#allocation8 + $0xc0] ss:$8 sps:$4 sm:$0xff]  }
  0xd3   :  { %294 = vmatprep.subr.bf16.mxu0 %v1454_v9  ;;  %541 = vmatprep.subr.bf16.mxu1 %v1475_v19  ;;  %v1505_v44 = vld [vmem:[#allocation8 + $0xd4] ss:$8 sps:$4 sm:$0xff]   ;;  %v1507_v45 = vld [vmem:[#allocation8 + $0xd0] ss:$8 sps:$4 sm:$0xff]   ;;  %v1508_v46 = vld [vmem:[#allocation8 + $0xe4] ss:$8 sps:$4 sm:$0xff]  }
  0xd4   :  { %v1510_v47 = vld [vmem:[#allocation8 + $0xe0] ss:$8 sps:$4 sm:$0xff]   ;;  %v1511_v48 = vld [vmem:[#allocation8 + $0xf4] ss:$8 sps:$4 sm:$0xff]   ;;  %v1513_v49 = vld [vmem:[#allocation8 + $0xf0] ss:$8 sps:$4 sm:$0xff]  }
  0xd5   :  { %v1514_v50 = vld [vmem:[#allocation11] ss:$8 sps:$4 sm:$0xff]   ;;  %v1516_v51 = vld [vmem:[#allocation11 + $0x4] ss:$8 sps:$4 sm:$0xff]   ;;  %v1519_v52 = vld [vmem:[#allocation11 + $0x14] ss:$8 sps:$4 sm:$0xff]  }
  0xd6   :  { %295 = vmatpush1.bf16.msra.mxu0 %v1456_v13  ;;  %542 = vmatpush1.bf16.msra.mxu1 %v1477_v22  ;;  %v1517_v53 = vld [vmem:[#allocation11 + $0x10] ss:$8 sps:$4 sm:$0xff]   ;;  %v1522_v54 = vld [vmem:[#allocation11 + $0x24] ss:$8 sps:$4 sm:$0xff]   ;;  %v1520_v55 = vld [vmem:[#allocation11 + $0x20] ss:$8 sps:$4 sm:$0xff]  }
  0xd7   :  { %296 = vmatprep.subr.bf16.mxu0 %v1457_v16  ;;  %543 = vmatprep.subr.bf16.mxu1 %v1478_v23  ;;  %v1525_v56 = vld [vmem:[#allocation11 + $0x34] ss:$8 sps:$4 sm:$0xff]   ;;  %v1523_v57 = vld [vmem:[#allocation11 + $0x30] ss:$8 sps:$4 sm:$0xff]   ;;  %v1528_v58 = vld [vmem:[#allocation11 + $0x44] ss:$8 sps:$4 sm:$0xff]  }
  0xd8   :  { %v1526_v59 = vld [vmem:[#allocation11 + $0x40] ss:$8 sps:$4 sm:$0xff]   ;;  %v1531_v60 = vld [vmem:[#allocation11 + $0x54] ss:$8 sps:$4 sm:$0xff]   ;;  %v1529_v61 = vld [vmem:[#allocation11 + $0x50] ss:$8 sps:$4 sm:$0xff]  }
  0xd9   :  { %v1534_v62 = vld [vmem:[#allocation11 + $0x64] ss:$8 sps:$4 sm:$0xff]   ;;  %v1532_v63 = vld [vmem:[#allocation11 + $0x60] ss:$8 sps:$4 sm:$0xff]   ;;  %v1537_v0 = vld [vmem:[#allocation11 + $0x74] ss:$8 sps:$4 sm:$0xff]  }
  0xda   :  { %297 = vmatpush1.bf16.msra.mxu0 %v1459_v17  ;;  %544 = vmatpush1.bf16.msra.mxu1 %v1480_v26  ;;  %v1535_v1 = vld [vmem:[#allocation11 + $0x70] ss:$8 sps:$4 sm:$0xff]   ;;  %v1540_v2 = vld [vmem:[#allocation11 + $0x84] ss:$8 sps:$4 sm:$0xff]   ;;  %v1538_v3 = vld [vmem:[#allocation11 + $0x80] ss:$8 sps:$4 sm:$0xff]  }
  0xdb   :  { %298 = vmatprep.subr.bf16.mxu0 %v1460_v20  ;;  %545 = vmatprep.subr.bf16.mxu1 %v1481_v27  ;;  %v1543_v4 = vld [vmem:[#allocation11 + $0x94] ss:$8 sps:$4 sm:$0xff]   ;;  %v1541_v5 = vld [vmem:[#allocation11 + $0x90] ss:$8 sps:$4 sm:$0xff]   ;;  %v1546_v6 = vld [vmem:[#allocation11 + $0xa4] ss:$8 sps:$4 sm:$0xff]  }
  0xdc   :  { %v1544_v7 = vld [vmem:[#allocation11 + $0xa0] ss:$8 sps:$4 sm:$0xff]   ;;  %v1549_v8 = vld [vmem:[#allocation11 + $0xb4] ss:$8 sps:$4 sm:$0xff]   ;;  %v1547_v9 = vld [vmem:[#allocation11 + $0xb0] ss:$8 sps:$4 sm:$0xff]  }
  0xdd   :  { %v197_v11 = vshrl.u32 %v196_v10, 7  ;;  %v194_v13 = vld [vmem:[#allocation7] sm:$0x3]  ;;  %v1552_v27 = vld [vmem:[#allocation11 + $0xc4] ss:$8 sps:$4 sm:$0xff]   ;;  %s1260_s19 = sshll.u32 %s1936_s10, 4  ;;  %s1261_s19 = int_to_ptr.vmem [resolvable:$true] %s1260_s19 }
  0xde   :  { %299 = vmatpush1.bf16.msra.mxu0 %v1462_v21  ;;  %546 = vmatpush1.bf16.msra.mxu1 %v1483_v28  ;;  %v1550_v28 = vld [vmem:[#allocation11 + $0xc0] ss:$8 sps:$4 sm:$0xff]   ;;  %s1884_s21 = scalar_lea.vmem %s1261_s19, 128  ;;  %p1889_p5 = scmp.lt.s32.totalorder %s1261_s19, %s1261_s19 }
  0xdf   :  { %300 = vmatprep.subr.bf16.mxu0 %v1463_v24  ;;  %547 = vmatprep.subr.bf16.mxu1 %v1484_v30  ;;  %v2141_v12 = vsub.s32 0, %v197_v11  ;;  %v2143_v14 = vsub.s32 1, %v197_v11  ;;  %v1553_v30 = vld [vmem:[#allocation11 + $0xd0] ss:$8 sps:$4 sm:$0xff]   ;;  %p1885_p4 = scmp.ne.s32.totalorder %s1261_s19, %s1884_s21  ;;  %p1890_p6 = scmp.lt.s32.totalorder %s1884_s21, %s1884_s21 }
  0xe0   :  { %v1603_v10 = vld [vmem:[#allocation14 + $0xd4] ss:$8 sps:$4 sm:$0xff]   ;;  %v1601_v11 = vld [vmem:[#allocation14 + $0xd0] ss:$8 sps:$4 sm:$0xff]  }
  0xe1   :  { %v199_v15 = vrot.slane %v194_v13, %v2141_v12  ;;  %v203_v16 = vrot.slane %v194_v13, %v2143_v14  ;;  %v1606_v13 = vld [vmem:[#allocation14 + $0xe4] ss:$8 sps:$4 sm:$0xff]   ;;  %p1891_p7 = por %p1890_p6, %p1889_p5 }
  0xe2   :  { %301 = vmatpush1.bf16.msra.mxu0 %v1465_v25  ;;  %548 = vmatpush1.bf16.msra.mxu1 %v1486_v31  ;;  %v1558_v31 = vld [vmem:[#allocation11 + $0xe4] ss:$8 sps:$4 sm:$0xff]  }
  0xe3   :  { %549 = vmatprep.subr.bf16.mxu1 %v1487_v32  ;;  %784 = vmatprep.subr.bf16.mxu0 %v1516_v51  ;;  %v1556_v32 = vld [vmem:[#allocation11 + $0xe0] ss:$8 sps:$4 sm:$0xff]   ;;  %p1892_p8 = pnand %p1891_p7, %p1885_p4 }
  0xe4   :  { %v1588_v51 = vld [vmem:[#allocation14 + $0x84] ss:$8 sps:$4 sm:$0xff]  }
  0xe5   :  { %319 = vmatmul.mubr.bf16.vlgmr.msra.gmra.mrb[0].mxu0 %v177_v29  ;;  %v1555_v29 = vld [vmem:[#allocation11 + $0xd4] ss:$8 sps:$4 sm:$0xff]  }
  0xe6   :  { %550 = vmatpush1.bf16.msra.mxu1 %v1489_v33  ;;  %785 = vmatpush1.bf16.msra.mxu0 %v1514_v50  ;;  %v1561_v33 = vld [vmem:[#allocation11 + $0xf4] ss:$8 sps:$4 sm:$0xff]  }
  0xe7   :  { %551 = vmatprep.subr.bf16.mxu1 %v1490_v34  ;;  %786 = vmatprep.subr.bf16.mxu0 %v1519_v52  ;;  %v1559_v34 = vld [vmem:[#allocation11 + $0xf0] ss:$8 sps:$4 sm:$0xff]   ;;  %v1586_v52 = vld [vmem:[#allocation14 + $0x80] ss:$8 sps:$4 sm:$0xff]  }
  0xe8   :  { %v1583_v50 = vld [vmem:[#allocation14 + $0x70] ss:$8 sps:$4 sm:$0xff]  }
  0xea   :  { %552 = vmatpush1.bf16.msra.mxu1 %v1492_v35  ;;  %787 = vmatpush1.bf16.msra.mxu0 %v1517_v53  ;;  %v1562_v35 = vld [vmem:[#allocation14] ss:$8 sps:$4 sm:$0xff]   ;;  %v1591_v53 = vld [vmem:[#allocation14 + $0x94] ss:$8 sps:$4 sm:$0xff]  }
  0xeb   :  { %553 = vmatprep.subr.bf16.mxu1 %v1493_v36  ;;  %788 = vmatprep.subr.bf16.mxu0 %v1522_v54  ;;  %v1564_v36 = vld [vmem:[#allocation14 + $0x4] ss:$8 sps:$4 sm:$0xff]   ;;  %v1589_v54 = vld [vmem:[#allocation14 + $0x90] ss:$8 sps:$4 sm:$0xff]  }
  0xee   :  { %554 = vmatpush1.bf16.msra.mxu1 %v1495_v37  ;;  %789 = vmatpush1.bf16.msra.mxu0 %v1520_v55  ;;  %v1567_v37 = vld [vmem:[#allocation14 + $0x14] ss:$8 sps:$4 sm:$0xff]   ;;  %v1594_v55 = vld [vmem:[#allocation14 + $0xa4] ss:$8 sps:$4 sm:$0xff]  }
  0xef   :  { %555 = vmatprep.subr.bf16.mxu1 %v1496_v38  ;;  %790 = vmatprep.subr.bf16.mxu0 %v1525_v56  ;;  %v1565_v38 = vld [vmem:[#allocation14 + $0x10] ss:$8 sps:$4 sm:$0xff]   ;;  %v1592_v56 = vld [vmem:[#allocation14 + $0xa0] ss:$8 sps:$4 sm:$0xff]  }
  0xf2   :  { %556 = vmatpush1.bf16.msra.mxu1 %v1498_v39  ;;  %791 = vmatpush1.bf16.msra.mxu0 %v1523_v57  ;;  %v1570_v39 = vld [vmem:[#allocation14 + $0x24] ss:$8 sps:$4 sm:$0xff]   ;;  %v1597_v57 = vld [vmem:[#allocation14 + $0xb4] ss:$8 sps:$4 sm:$0xff]  }
  0xf3   :  { %557 = vmatprep.subr.bf16.mxu1 %v1499_v40  ;;  %792 = vmatprep.subr.bf16.mxu0 %v1528_v58  ;;  %v1568_v40 = vld [vmem:[#allocation14 + $0x20] ss:$8 sps:$4 sm:$0xff]   ;;  %v1595_v58 = vld [vmem:[#allocation14 + $0xb0] ss:$8 sps:$4 sm:$0xff]  }
  0xf6   :  { %558 = vmatpush1.bf16.msra.mxu1 %v1501_v41  ;;  %793 = vmatpush1.bf16.msra.mxu0 %v1526_v59  ;;  %v1573_v41 = vld [vmem:[#allocation14 + $0x34] ss:$8 sps:$4 sm:$0xff]  }
  0xf7   :  { %559 = vmatprep.subr.bf16.mxu1 %v1502_v42  ;;  %794 = vmatprep.subr.bf16.mxu0 %v1531_v60  ;;  %v1571_v42 = vld [vmem:[#allocation14 + $0x30] ss:$8 sps:$4 sm:$0xff]   ;;  %v363_v59 = vld [vmem:[#allocation10] sm:$0x3] }
  0xf8   :  { %v368_v60 = vrot.slane %v363_v59, %v2141_v12 }
  0xfa   :  { %560 = vmatpush1.bf16.msra.mxu1 %v1504_v43  ;;  %795 = vmatpush1.bf16.msra.mxu0 %v1529_v61  ;;  %v1576_v43 = vld [vmem:[#allocation14 + $0x44] ss:$8 sps:$4 sm:$0xff]   ;;  %v372_v61 = vrot.slane %v363_v59, %v2143_v14 }
  0xfb   :  { %561 = vmatprep.subr.bf16.mxu1 %v1505_v44  ;;  %796 = vmatprep.subr.bf16.mxu0 %v1534_v62  ;;  %v1574_v44 = vld [vmem:[#allocation14 + $0x40] ss:$8 sps:$4 sm:$0xff]  }
  0xfe   :  { %562 = vmatpush1.bf16.msra.mxu1 %v1507_v45  ;;  %797 = vmatpush1.bf16.msra.mxu0 %v1532_v63  ;;  %v1579_v45 = vld [vmem:[#allocation14 + $0x54] ss:$8 sps:$4 sm:$0xff]  }
  0xff   :  { %563 = vmatprep.subr.bf16.mxu1 %v1508_v46  ;;  %798 = vmatprep.subr.bf16.mxu0 %v1537_v0  ;;  %v1577_v46 = vld [vmem:[#allocation14 + $0x50] ss:$8 sps:$4 sm:$0xff]  }
 0x102   :  { %564 = vmatpush1.bf16.msra.mxu1 %v1510_v47  ;;  %799 = vmatpush1.bf16.msra.mxu0 %v1535_v1  ;;  %v1582_v47 = vld [vmem:[#allocation14 + $0x64] ss:$8 sps:$4 sm:$0xff]  }
 0x103   :  { %565 = vmatprep.subr.bf16.mxu1 %v1511_v48  ;;  %800 = vmatprep.subr.bf16.mxu0 %v1540_v2  ;;  %v1580_v48 = vld [vmem:[#allocation14 + $0x60] ss:$8 sps:$4 sm:$0xff]  }
 0x106   :  { %566 = vmatpush1.bf16.msra.mxu1 %v1513_v49  ;;  %801 = vmatpush1.bf16.msra.mxu0 %v1538_v3  ;;  %v1585_v49 = vld [vmem:[#allocation14 + $0x74] ss:$8 sps:$4 sm:$0xff]  }
 0x107   :  { %802 = vmatprep.subr.bf16.mxu0 %v1543_v4  ;;  %1033 = vmatprep.subr.bf16.mxu1 %v1564_v36 }
 0x10a   :  { %803 = vmatpush1.bf16.msra.mxu0 %v1541_v5 }
 0x10b   :  { %804 = vmatprep.subr.bf16.mxu0 %v1546_v6 }
 0x10e   :  { %805 = vmatpush1.bf16.msra.mxu0 %v1544_v7 }
 0x10f   :  { %806 = vmatprep.subr.bf16.mxu0 %v1549_v8  ;;  %v1600_v8 = vld [vmem:[#allocation14 + $0xc4] ss:$8 sps:$4 sm:$0xff]  }
 0x112   :  { %807 = vmatpush1.bf16.msra.mxu0 %v1547_v9  ;;  %v1598_v9 = vld [vmem:[#allocation14 + $0xc0] ss:$8 sps:$4 sm:$0xff]  }
 0x113   :  { %808 = vmatprep.subr.bf16.mxu0 %v1552_v27 }
 0x116   :  { %809 = vmatpush1.bf16.msra.mxu0 %v1550_v28 }
 0x117   :  { %810 = vmatprep.subr.bf16.mxu0 %v1555_v29 }
 0x11a   :  { %811 = vmatpush1.bf16.msra.mxu0 %v1553_v30 }
 0x11b   :  { %812 = vmatprep.subr.bf16.mxu0 %v1558_v31 }
 0x11e   :  { %813 = vmatpush1.bf16.msra.mxu0 %v1556_v32 }
 0x11f   :  { %814 = vmatprep.subr.bf16.mxu0 %v1561_v33 }
 0x122   :  { %815 = vmatpush1.bf16.msra.mxu0 %v1559_v34 }
 0x1b8   :  { %v320_v17 = vpop.f32.mrb[0].mxu0 }
 0x1b9   :  { %v321_v18 = vadd.f32 %v320_v17, %v199_v15  ;;  %v322_v19 = vpop.f32.mrb[1].mxu0  ;;  %v1604_v15 = vld [vmem:[#allocation14 + $0xe0] ss:$8 sps:$4 sm:$0xff]   ;;  %v1607_v17 = vld [vmem:[#allocation14 + $0xf0] ss:$8 sps:$4 sm:$0xff]  }
 0x1ba   :  { %v323_v20 = vadd.f32 %v322_v19, %v203_v16  ;;  %v324_v21 = vpop.f32.mrb[2].mxu0  ;;  %v1609_v16 = vld [vmem:[#allocation14 + $0xf4] ss:$8 sps:$4 sm:$0xff]   ;;  %v1611_v19 = vld [vmem:[#allocation17] sm:$0xff]  }
 0x1bb   :  { %1626 = vtanh.f32 %v321_v18  ;;  %v325_v22 = vpop.f32.mrb[3].mxu0  ;;  %v1610_v18 = vld [vmem:[#allocation17 + $0x40] sm:$0xff]   ;;  %v1613_v21 = vld [vmem:[#allocation17 + $0x8] sm:$0xff]  }
 0x1bc   :  { %1628 = vtanh.f32 %v323_v20  ;;  %v1612_v20 = vld [vmem:[#allocation17 + $0x48] sm:$0xff]   ;;  %1403 = vmatprep.subr.bf16.mxu0 %v1610_v18  ;;  %v1614_v22 = vld [vmem:[#allocation17 + $0x50] sm:$0xff]  }
 0x1c5   :  { %v1627_v23 = vpop.eup %1626 }
 0x1c6   :  { %v1629_v24 = vpop.eup %1628  ;;  %v329_v26 = vpack.c.bf16 %v1627_v23, %v1627_v23  ;;  %v1615_v23 = vld [vmem:[#allocation17 + $0x10] sm:$0xff]  }
 0x1c7   :  { %v330_v25 = vpack.c.bf16 %v1629_v24, %v1629_v24  ;;  %v1616_v24 = vld [vmem:[#allocation17 + $0x58] sm:$0xff]  }
 0x1c9   :  { %567 = vmatprep.mubr.bf16.mxu1 %v330_v25  ;;  %v1617_v25 = vld [vmem:[#allocation17 + $0x18] sm:$0xff]  }
 0x1ca   :  { %568 = vmatmul.mubr.bf16.vlgmr.msra.gmra.mrb[0].mxu1 %v329_v26  ;;  %v612_v26 = vld [vmem:[#allocation13] sm:$0x3] }
 0x1cb   :  { %1034 = vmatpush1.bf16.msra.mxu1 %v1562_v35  ;;  %v617_v27 = vrot.slane %v612_v26, %v2141_v12  ;;  %v621_v28 = vrot.slane %v612_v26, %v2143_v14 }
 0x1cc   :  { %1035 = vmatprep.subr.bf16.mxu1 %v1567_v37 }
 0x1cf   :  { %1036 = vmatpush1.bf16.msra.mxu1 %v1565_v38 }
 0x1d0   :  { %1037 = vmatprep.subr.bf16.mxu1 %v1570_v39  ;;  %v1618_v39 = vld [vmem:[#allocation17 + $0x60] sm:$0xff]  }
 0x1d3   :  { %1038 = vmatpush1.bf16.msra.mxu1 %v1568_v40  ;;  %v1619_v40 = vld [vmem:[#allocation17 + $0x20] sm:$0xff]  }
 0x1d4   :  { %1039 = vmatprep.subr.bf16.mxu1 %v1573_v41  ;;  %v1620_v41 = vld [vmem:[#allocation17 + $0x68] sm:$0xff]  }
 0x1d7   :  { %1040 = vmatpush1.bf16.msra.mxu1 %v1571_v42  ;;  %v1621_v42 = vld [vmem:[#allocation17 + $0x28] sm:$0xff]  }
 0x1d8   :  { %1041 = vmatprep.subr.bf16.mxu1 %v1576_v43  ;;  %v1622_v43 = vld [vmem:[#allocation17 + $0x70] sm:$0xff]  }
 0x1db   :  { %1042 = vmatpush1.bf16.msra.mxu1 %v1574_v44  ;;  %v1623_v44 = vld [vmem:[#allocation17 + $0x30] sm:$0xff]  }
 0x1dc   :  { %1043 = vmatprep.subr.bf16.mxu1 %v1579_v45  ;;  %v1624_v45 = vld [vmem:[#allocation17 + $0x78] sm:$0xff]  }
 0x1df   :  { %1044 = vmatpush1.bf16.msra.mxu1 %v1577_v46  ;;  %v1625_v46 = vld [vmem:[#allocation17 + $0x38] sm:$0xff]  }
 0x1e0   :  { %1045 = vmatprep.subr.bf16.mxu1 %v1582_v47  ;;  %v861_v47 = vld [vmem:[#allocation16] sm:$0x3] }
 0x1e3   :  { %1046 = vmatpush1.bf16.msra.mxu1 %v1580_v48  ;;  %v866_v48 = vrot.slane %v861_v47, %v2141_v12 }
 0x1e4   :  { %1047 = vmatprep.subr.bf16.mxu1 %v1585_v49  ;;  %v870_v49 = vrot.slane %v861_v47, %v2143_v14 }
 0x1e7   :  { %1048 = vmatpush1.bf16.msra.mxu1 %v1583_v50 }
 0x1e8   :  { %1049 = vmatprep.subr.bf16.mxu1 %v1588_v51 }
 0x1eb   :  { %1050 = vmatpush1.bf16.msra.mxu1 %v1586_v52 }
 0x1ec   :  { %1051 = vmatprep.subr.bf16.mxu1 %v1591_v53 }
 0x1ef   :  { %1052 = vmatpush1.bf16.msra.mxu1 %v1589_v54 }
 0x1f0   :  { %1053 = vmatprep.subr.bf16.mxu1 %v1594_v55 }
 0x1f3   :  { %1054 = vmatpush1.bf16.msra.mxu1 %v1592_v56 }
 0x1f4   :  { %1055 = vmatprep.subr.bf16.mxu1 %v1597_v57 }
 0x1f7   :  { %1056 = vmatpush1.bf16.msra.mxu1 %v1595_v58 }
 0x1f8   :  { %1057 = vmatprep.subr.bf16.mxu1 %v1600_v8 }
 0x1fb   :  { %1058 = vmatpush1.bf16.msra.mxu1 %v1598_v9 }
 0x1fc   :  { %1059 = vmatprep.subr.bf16.mxu1 %v1603_v10 }
 0x1ff   :  { %1060 = vmatpush1.bf16.msra.mxu1 %v1601_v11 }
 0x200   :  { %1061 = vmatprep.subr.bf16.mxu1 %v1606_v13 }
 0x203   :  { %1062 = vmatpush1.bf16.msra.mxu1 %v1604_v15 }
 0x204   :  { %1063 = vmatprep.subr.bf16.mxu1 %v1609_v16 }
 0x207   :  { %1064 = vmatpush1.bf16.msra.mxu1 %v1607_v17 }
 0x29d   :  { %v569_v62 = vpop.f32.mrb[0].mxu1 }
 0x29e   :  { %v570_v63 = vadd.f32 %v569_v62, %v368_v60  ;;  %v571_v0 = vpop.f32.mrb[1].mxu1 }
 0x29f   :  { %v572_v1 = vadd.f32 %v571_v0, %v372_v61  ;;  %v573_v2 = vpop.f32.mrb[2].mxu1  ;;  %v1386_v61 = vld [vmem:[#allocation19] ss:$0 sm:$0xff] }
 0x2a0   :  { %1630 = vtanh.f32 %v570_v63  ;;  %v574_v3 = vpop.f32.mrb[3].mxu1 }
 0x2a1   :  { %1632 = vtanh.f32 %v572_v1 }
 0x2aa   :  { %v1631_v4 = vpop.eup %1630 }
 0x2ab   :  { %v1633_v5 = vpop.eup %1632  ;;  %v578_v7 = vpack.c.bf16 %v1631_v4, %v1631_v4 }
 0x2ac   :  { %v579_v6 = vpack.c.bf16 %v1633_v5, %v1633_v5 }
 0x2ae   :  { %816 = vmatprep.mubr.bf16.mxu0 %v579_v6 }
 0x2af   :  { %817 = vmatmul.mubr.bf16.vlgmr.msra.gmra.mrb[4].mxu0 %v578_v7 }
 0x2b0   :  { %1404 = vmatpush3.bf16.msra.mxu0 %v1611_v19 }
 0x2b1   :  { %1405 = vmatprep.subr.bf16.mxu0 %v1612_v20 }
 0x2b4   :  { %1406 = vmatpush3.bf16.msra.mxu0 %v1613_v21 }
 0x2b5   :  { %1407 = vmatprep.subr.bf16.mxu0 %v1614_v22 }
 0x2b8   :  { %1408 = vmatpush3.bf16.msra.mxu0 %v1615_v23 }
 0x2b9   :  { %1409 = vmatprep.subr.bf16.mxu0 %v1616_v24 }
 0x2bc   :  { %1410 = vmatpush3.bf16.msra.mxu0 %v1617_v25 }
 0x2bd   :  { %1411 = vmatprep.subr.bf16.mxu0 %v1618_v39 }
 0x2c0   :  { %1412 = vmatpush3.bf16.msra.mxu0 %v1619_v40 }
 0x2c1   :  { %1413 = vmatprep.subr.bf16.mxu0 %v1620_v41 }
 0x2c4   :  { %1414 = vmatpush3.bf16.msra.mxu0 %v1621_v42 }
 0x2c5   :  { %1415 = vmatprep.subr.bf16.mxu0 %v1622_v43 }
 0x2c8   :  { %1416 = vmatpush3.bf16.msra.mxu0 %v1623_v44 }
 0x2c9   :  { %1417 = vmatprep.subr.bf16.mxu0 %v1624_v45 }
 0x2cc   :  { %1418 = vmatpush3.bf16.msra.mxu0 %v1625_v46 }
 0x382   :  { %v818_v29 = vpop.f32.mrb[4].mxu0 }
 0x383   :  { %v819_v30 = vadd.f32 %v818_v29, %v617_v27  ;;  %v820_v31 = vpop.f32.mrb[5].mxu0 }
 0x384   :  { %v821_v32 = vadd.f32 %v820_v31, %v621_v28  ;;  %v822_v33 = vpop.f32.mrb[6].mxu0 }
 0x385   :  { %1634 = vtanh.f32 %v819_v30  ;;  %v823_v34 = vpop.f32.mrb[7].mxu0 }
 0x386   :  { %1636 = vtanh.f32 %v821_v32 }
 0x38f   :  { %v1635_v35 = vpop.eup %1634 }
 0x390   :  { %v1637_v36 = vpop.eup %1636  ;;  %v827_v38 = vpack.c.bf16 %v1635_v35, %v1635_v35 }
 0x391   :  { %v828_v37 = vpack.c.bf16 %v1637_v36, %v1637_v36 }
 0x393   :  { %1065 = vmatprep.mubr.bf16.mxu1 %v828_v37 }
 0x394   :  { %1066 = vmatmul.mubr.bf16.vlgmr.msra.gmra.mrb[4].mxu1 %v827_v38 }
 0x467   :  { %v1067_v50 = vpop.f32.mrb[4].mxu1 }
 0x468   :  { %v1068_v51 = vadd.f32 %v1067_v50, %v866_v48  ;;  %v1069_v52 = vpop.f32.mrb[5].mxu1 }
 0x469   :  { %v1070_v53 = vadd.f32 %v1069_v52, %v870_v49  ;;  %v1071_v54 = vpop.f32.mrb[6].mxu1 }
 0x46a   :  { %1638 = vtanh.f32 %v1068_v51  ;;  %v1072_v55 = vpop.f32.mrb[7].mxu1 }
 0x46b   :  { %1640 = vtanh.f32 %v1070_v53 }
 0x474   :  { %v1639_v56 = vpop.eup %1638 }
 0x475   :  { %v1641_v57 = vpop.eup %1640  ;;  %v1076_v59 = vpack.c.bf16 %v1639_v56, %v1639_v56 }
 0x476   :  { %v1077_v58 = vpack.c.bf16 %v1641_v57, %v1641_v57 }
 0x478   :  { %1245 = vmatprep.mubr.bf16.mxu0 %v1077_v58 }
 0x479   :  { %1246 = vmatmul.mubr.bf16.vlgmr.msra.gmra.mrb[8].mxu0 %v1076_v59 }
 0x54c   :  { %v1419_v60 = vpop.f32.mrb[8].mxu0 }
 0x54d   :  { %v1420_v62 = vpop.f32.mrb[9].mxu0 }
 0x54e   :  { %v1421_v12 = vadd.f32 %v1420_v62, %v1419_v60  ;;  %v1422_v14 = vpop.f32.mrb[10].mxu0 }
 0x54f   :  { %v1423_v63 = vpop.f32.mrb[11].mxu0 }
 0x550   :  { %v1248_v0 = vadd.f32 %v1421_v12, %v1386_v61 }
 0x552   :  { %1253 = vst [vmem:[#allocation20] sm:$0xff] %v1248_v0 }
 0x553   :  { %1895 = shalt.err (!%p1892_p8)
}
 0x554   :  { %s1896_s27 = scalar_lea.hbm %s2176_s11, 128 }
 0x555   :  { %p1897_p9 = scmp.ne.s32.totalorder %s2176_s11, %s1896_s27  ;;  %p1900_p10 = scmp.lt.u32.totalorder %s1896_s27, %s2176_s11 }
 0x557   :  { %p1902_p11 = pnand %p1900_p10, %p1897_p9 }
 0x559   :  { %1905 = shalt.err (!%p1902_p11)
}
 0x55a   :  { %1263 = dma.vmem_to_hbm [thread:$0]  %s1261_s19, 128, %s2176_s11, [#allocation4]  }
 0x55b   :  { %1918 = dma.done.wait [#allocation4], 128  }
 0x55c   :  { %1919 = vsyncadd [#allocation4], 4294967168 }
 0x55d   :  { %1267 = vsyncpa [#allocation3], 1 }
 0x55e   :  { %1268 = vsyncpa [#allocation6], 1 }
 0x55f   :  { %1269 = vsyncpa [#allocation9], 1 }
 0x560   :  { %1270 = vsyncpa [#allocation12], 1 }
 0x561   :  { %1271 = vsyncpa [#allocation15], 1 }
 0x562   :  { %1272 = vsyncpa [#allocation18], 1 }
 0x563   :  { %1273 = vsyncpa [#allocation4], 1 }

</bundles_post_ra>
